<compile_context>
chip_gen: v7x
topology: tpu7x:2x2x1
jax: 0.10.0
libtpu: 0.0.40
codegen_flags: <defaults>
</compile_context>

<pallas_src>
import math

import jax
import jax.numpy as jnp
from jax.experimental import pallas as pl
from jax.experimental.pallas import tpu as pltpu


_TARGET_BLOCK_BYTES = 2 * 1024 * 1024   # ~2 MiB blocks: 85%+ of HBM roofline
_MIN_SPLIT_BYTES = 2 * 1024 * 1024      # force >=4 grid steps above this size
_MAX_BLOCK_BYTES = 8 * 1024 * 1024      # hard cap; beyond this bail to XLA


def _rescale_kernel(scale_ref, x_ref, o_ref):
    # scale_ref: (1, L) VMEM row holding exp(weight) tiled along lanes
    #            (constant index_map -> stays resident, not re-DMA'd per step).
    # x_ref / o_ref: (tr, L) VMEM tiles.  Single VPU multiply; the (1, L) row
    # broadcasts over sublanes for free.
    o_ref[...] = x_ref[...] * scale_ref[...]


def rescale_channel(x, weight, *, donate_x=False):
    """y = exp(weight) * x with weight of shape (C,) broadcasting over x[..., C]."""
    C = weight.shape[0]
    assert x.shape[-1] == C, "channel dim must be the last dim of x"
    orig_shape = x.shape
    dtype = x.dtype
    total = x.size
    itemsize = jnp.dtype(dtype).itemsize

    # Hoist exp(weight): computed once by XLA, not once per grid step.
    scale = jnp.exp(weight).astype(dtype)

    # Lane-dense slab width: smallest multiple of both C and 128.
    lane = (C * 128) // math.gcd(C, 128)  # lcm(C, 128)
    row_bytes = lane * itemsize
    sub = {4: 8, 2: 16, 1: 32}.get(itemsize, 8)  # sublane packing granularity

    # Bail to XLA's fused elementwise op when we can't present a lane-dense
    # slab (masked vst.msk stores are ~4.5x worse and no better than XLA), or
    # when even a minimal sub-row block would exceed the VMEM budget.
    if total == 0 or (total % lane != 0) or (sub * row_bytes > _MAX_BLOCK_BYTES):
        return scale * x

    rows = total // lane
    x2d = x.reshape(rows, lane)
    # Row-major flattening of (..., C) repeats channels every C lanes, so the
    # tiled scale row reproduces the per-channel broadcast exactly.
    scale_row = jnp.tile(scale, lane // C).reshape(1, lane)

    # --- Row tile: byte budget, sublane-aligned, >=4 steps for large inputs.
    total_bytes = total * itemsize
    if rows <= sub:
        tr = rows                                   # full extent (always legal)
    else:
        tr = max(sub, (_TARGET_BLOCK_BYTES // row_bytes) // sub * sub)
        if total_bytes >= _MIN_SPLIT_BYTES:
            # Guarantee >=4 grid steps so both v7x TensorCores get work and
            # the DMA pipeline has something to overlap.
            cap = max(sub, (pl.cdiv(rows, 4) // sub) * sub)
            tr = min(tr, cap)
        tr = min(tr, rows)                          # tr is mult-of-sub or ==rows
    grid = (pl.cdiv(rows, tr),)                     # partial last block is masked

    cost = pl.CostEstimate(
        flops=total, transcendentals=0, bytes_accessed=2 * total * itemsize
    )

    y2d = pl.pallas_call(
        _rescale_kernel,
        out_shape=jax.ShapeDtypeStruct((rows, lane), dtype),
        grid_spec=pl.GridSpec(
            grid=grid,
            in_specs=[
                pl.BlockSpec((1, lane), lambda i: (0, 0)),   # scale row (resident)
                pl.BlockSpec((tr, lane), lambda i: (i, 0)),  # x tile
            ],
            out_specs=pl.BlockSpec((tr, lane), lambda i: (i, 0)),
        ),
        compiler_params=pltpu.CompilerParams(
            dimension_semantics=("parallel",),
        ),
        cost_estimate=cost,
        # Alias x's buffer to the output when the caller donates it (removes
        # the extra HBM allocation; bytes moved are unchanged).
        input_output_aliases=({1: 0} if donate_x else {}),
    )(scale_row, x2d)

    return y2d.reshape(orig_shape)


if __name__ == "__main__":
    key = jax.random.PRNGKey(0)
    num_channels = 16
    # nn.Parameter(torch.zeros([num_channels]))
    weight = jnp.zeros((num_channels,), dtype=jnp.float32)
    # Channels-last input consistent with torch broadcasting of a (C,) weight.
    x = jax.random.normal(key, (2, 4, 16, num_channels), dtype=jnp.float32)

    # Module's NaN guard, kept eager and outside the jitted hot path.
    # TODO(synk): for in-graph validation use jax.experimental.checkify instead.
    if bool(jnp.any(jnp.isnan(jnp.exp(weight)))):
        raise RuntimeError("Rescale factor has NaN entries")

    fn = jax.jit(rescale_channel)
    y = jax.block_until_ready(fn(x, weight))

    ref = jnp.exp(weight) * x
    assert y.shape == x.shape and y.dtype == x.dtype
    assert jnp.allclose(y, ref, atol=1e-6, rtol=1e-6)

    print("KERNEL_OK")
</pallas_src>

<mosaic_0001>
module attributes {stable_mosaic.version = 11 : i64} {
  func.func @_rescale_kernel(%arg0: i32, %arg1: memref<1x128xf32, #tpu.memory_space<vmem>>, %arg2: memref<16x128xf32, #tpu.memory_space<vmem>>, %arg3: memref<16x128xf32, #tpu.memory_space<vmem>>) attributes {dimension_semantics = [#tpu.dimension_semantics<parallel>], iteration_bounds = array<i64: 1>, scalar_prefetch = 0 : i64, scratch_operands = 0 : i64, tpu.core_type = #tpu.core_type<tc>, window_params = [{pipeline_mode = #tpu.pipeline_mode<synchronous>, transform_indices = @transform_0, window_bounds = array<i64: 1, 128>}, {transform_indices = @transform_1, window_bounds = array<i64: 16, 128>}, {transform_indices = @transform_2, window_bounds = array<i64: 16, 128>}]} {
    %c0 = arith.constant 0 : index
    %c0_0 = arith.constant 0 : index
    %0 = vector.load %arg2[%c0, %c0_0] : memref<16x128xf32, #tpu.memory_space<vmem>>, vector<16x128xf32>
    %c0_1 = arith.constant 0 : index
    %c0_2 = arith.constant 0 : index
    %1 = vector.load %arg1[%c0_1, %c0_2] : memref<1x128xf32, #tpu.memory_space<vmem>>, vector<1x128xf32>
    %2 = vector.broadcast %1 : vector<1x128xf32> to vector<16x128xf32>
    %3 = arith.mulf %0, %2 : vector<16x128xf32>
    %c0_3 = arith.constant 0 : index
    %c0_4 = arith.constant 0 : index
    %4 = vector.load %arg3[%c0_3, %c0_4] : memref<16x128xf32, #tpu.memory_space<vmem>>, vector<16x128xf32>
    tpu.vector_store %arg3[%c0_3, %c0_4], %3 {strides = array<i32>} : memref<16x128xf32, #tpu.memory_space<vmem>>, vector<16x128xf32>,
    return
  }
  func.func @transform_0(%arg0: i32) -> (i32, i32) {
    %c0_i32 = arith.constant 0 : i32
    %c0_i32_0 = arith.constant 0 : i32
    %c0_i32_1 = arith.constant 0 : i32
    return %c0_i32, %c0_i32_0 : i32, i32
  }
  func.func @transform_1(%arg0: i32) -> (i32, i32) {
    %c0_i32 = arith.constant 0 : i32
    %c0_i32_0 = arith.constant 0 : i32
    return %arg0, %c0_i32 : i32, i32
  }
  func.func @transform_2(%arg0: i32) -> (i32, i32) {
    %c0_i32 = arith.constant 0 : i32
    %c0_i32_0 = arith.constant 0 : i32
    return %arg0, %c0_i32 : i32, i32
  }
}

</mosaic_0001>

<bundles_post_ra>
// kernel: tile.9
= control target key start
LH: loop header
LB: loop body
LE: loop exit
PB: predicated region body
PF: predicated region fallthrough
CT: control target
= control target key end

     0   :  { %s67_s10 = smov 112   ;;  %s68_s11 = smov 80   ;;  %vm3_vm0 = vcmask 130048   ;;  %vm9_vm1 = vcmask 1048448   ;;  %vm15_vm2 = vcmask 917248   ;;  %vm21_vm3 = vcmask 786048   ;;  %s111_s0 = inlined_call_operand.vmem [shape: f32[8,16], index: 0, kind: input, shape index: {}]   ;;  %s112_s1 = inlined_call_operand.vmem [shape: f32[1,128], index: 1, kind: output, shape index: {}]  }
   0x1   :  { %v53_v0 = vld [vmem:[%s111_s0 + $0x7] sm:$0x1]   ;;  %v55_v1 = vld [vmem:[%s111_s0 + $0x5] sm:$0x1]   ;;  %v54_v2 = vld [vmem:[%s111_s0 + $0x6] sm:$0x1]  }
   0x2   :  { %7 = vrot.lane.b32.xlu0 %v53_v0, %s67_s10  ;;  %19 = vrot.lane.b32.xlu1 %v55_v1, %s68_s11  ;;  %v56_v3 = vld [vmem:[%s111_s0 + $0x4] sm:$0x1]   ;;  %v2_v4 = vld [vmem:[%s111_s0] sm:$0x1]   ;;  %s69_s18 = smov 96   ;;  %s70_s19 = smov 64  }
   0x3   :  { %4 = vst.msk [vmem:[#allocation0] sm:$0x1] %vm3_vm0, %v2_v4   ;;  %v57_v5 = vld [vmem:[%s111_s0 + $0x3] sm:$0x1]   ;;  %v58_v6 = vld [vmem:[%s111_s0 + $0x2] sm:$0x1]  }
   0x4   :  { %s71_s24 = smov 48   ;;  %s72_s25 = smov 32   ;;  %v59_v7 = vld [vmem:[%s111_s0 + $0x1] sm:$0x1]   ;;  %vm27_vm4 = vcmask 654848   ;;  %vm33_vm5 = vcmask 523648  }
   0x5   :  { %s73_s0 = smov 16   ;;  %vm39_vm6 = vcmask 392448   ;;  %vm45_vm7 = vcmask 261248  }
   0x6   :  { %13 = vrot.lane.b32.xlu0 %v54_v2, %s69_s18  ;;  %25 = vrot.lane.b32.xlu1 %v56_v3, %s70_s19 }
   0xa   :  { %31 = vrot.lane.b32.xlu0 %v57_v5, %s71_s24  ;;  %37 = vrot.lane.b32.xlu1 %v58_v6, %s72_s25 }
   0xe   :  { %43 = vrot.lane.b32.xlu0 %v59_v7, %s73_s0 }
  0x74   :  { %v8_v8 = vpop.permute.xlu0 %7   ;;  %v20_v9 = vpop.permute.xlu1 %19  }
  0x75   :  { %10 = vst.msk [vmem:[#allocation0] sm:$0x1] %vm9_vm1, %v8_v8  }
  0x78   :  { %v14_v10 = vpop.permute.xlu0 %13   ;;  %v26_v11 = vpop.permute.xlu1 %25  }
  0x79   :  { %16 = vst.msk [vmem:[#allocation0] sm:$0x1] %vm15_vm2, %v14_v10  }
  0x7a   :  { %22 = vst.msk [vmem:[#allocation0] sm:$0x1] %vm21_vm3, %v20_v9  }
  0x7b   :  { %28 = vst.msk [vmem:[#allocation0] sm:$0x1] %vm27_vm4, %v26_v11  }
  0x7c   :  { %v32_v12 = vpop.permute.xlu0 %31   ;;  %v38_v13 = vpop.permute.xlu1 %37  }
  0x7d   :  { %34 = vst.msk [vmem:[#allocation0] sm:$0x1] %vm33_vm5, %v32_v12  }
  0x7e   :  { %40 = vst.msk [vmem:[#allocation0] sm:$0x1] %vm39_vm6, %v38_v13  }
  0x80   :  { %v44_v14 = vpop.permute.xlu0 %43  }
  0x81   :  { %46 = vst.msk [vmem:[#allocation0] sm:$0x1] %vm45_vm7, %v44_v14  }
  0x88   :  { %v50_v15 = vld [vmem:[#allocation0] sm:$0x1] }
  0x89   :  { %52 = vst [vmem:[%s112_s1] sm:$0x1] %v50_v15 }

// kernel: tile.8
= control target key start
LH: loop header
LB: loop body
LE: loop exit
PB: predicated region body
PF: predicated region fallthrough
CT: control target
= control target key end

     0   :  { %s22_s0 = inlined_call_operand.vmem [shape: f32[16], index: 0, kind: input, shape index: {}]   ;;  %s23_s1 = inlined_call_operand.vmem [shape: f32[8,16], index: 1, kind: output, shape index: {}]  }
   0x1   :  { %v4_v0 = vld [vmem:[%s22_s0] ss:$0 sm:$0xff] }
   0x2   :  { %5 = vst [vmem:[%s23_s1] sm:$0xff] %v4_v0 }

// kernel: rescale_channel.1
= control target key start
LH: loop header
LB: loop body
LE: loop exit
PB: predicated region body
PF: predicated region fallthrough
CT: control target
= control target key end

     0   :  { %s59_s0 = inlined_call_operand.vmem [shape: f32[1,128], index: 0, kind: input, shape index: {}]   ;;  %s60_s1 = inlined_call_operand.vmem [shape: f32[16,128], index: 1, kind: input, shape index: {}]   ;;  %s61_s2 = inlined_call_operand.vmem [shape: f32[16,128], index: 2, kind: output, shape index: {}]  }
   0x1   :  { %v11_v0 = vld [vmem:[%s60_s1] sm:$0xff]  ;;  %v12_v2 = vld [vmem:[%s60_s1 + $0x8] sm:$0xff] }
   0x2   :  { %v28_v1 = vld [vmem:[%s59_s0] ss:$0 sm:$0xff] }
   0x3   :  { %v20_v3 = vmul.f32 %v28_v1, %v11_v0  ;;  %v21_v4 = vmul.f32 %v28_v1, %v12_v2 }
   0x5   :  { %22 = vst [vmem:[%s61_s2] sm:$0xff] %v20_v3  ;;  %23 = vst [vmem:[%s61_s2 + $0x8] sm:$0xff] %v21_v4 }

</bundles_post_ra>
